<compile_context>
chip_gen: v6e
topology: v6e:2x2x1
jax: 0.10.0
libtpu: 0.0.40
codegen_flags: <defaults>
</compile_context>

<pallas_src>
import jax
import jax.numpy as jnp
from jax.experimental import pallas as pl
from jax.experimental.pallas import tpu as pltpu


# --------------------------------------------------------------------------- utils

def _vmem_capacity_bytes() -> int:
    """Per-TensorCore VMEM capacity; conservative (v7x) fallback if unqueryable."""
    try:
        info = pltpu.get_tpu_info()
        cap = int(getattr(info, "vmem_capacity_bytes", 0) or 0)
        if cap > 0:
            return cap
    except Exception:
        pass
    return 64 * 1024 * 1024


def _pack_columns(cols):
    """Pack a list of (C, 1) f32 columns into a (C, len(cols)) matrix.

    Uses iota + select only (no lane-dim concatenate), which lowers cleanly on
    Mosaic for arbitrary small column counts.
    """
    n = len(cols)
    c = cols[0].shape[0]
    idx = jax.lax.broadcasted_iota(jnp.int32, (c, n), 1)
    out = jnp.zeros((c, n), jnp.float32)
    for j, v in enumerate(cols):
        out = jnp.where(idx == j, v, out)
    return out


def _mlp_cols(pooled, w1_ref, w2_ref):
    """Shared MLP applied column-wise: (C, N) -> (C, N)."""
    h = jnp.maximum(
        jnp.dot(w1_ref[...], pooled, preferred_element_type=jnp.float32), 0.0)
    return jnp.dot(w2_ref[...], h, preferred_element_type=jnp.float32)


# ------------------------------------------------------------------------- kernels

def _whole_batch_kernel(x_ref, w1_ref, w2_ref, o_ref):
    """Small-problem path: whole (B, C, HW) tensor in a single grid step.

    All 2B pooled vectors are packed into one (C, 2B) operand so the shared MLP
    runs exactly once (one W1 matmul + one W2 matmul) for the entire batch.
    """
    b_count = x_ref.shape[0]
    hw = x_ref.shape[-1]
    inv_hw = jnp.float32(1.0 / hw)

    cols = []
    for b in range(b_count):
        xb = x_ref[b].astype(jnp.float32)                          # (C, HW)
        cols.append(jnp.sum(xb, axis=-1, keepdims=True) * inv_hw)  # avg pool, col 2b
        cols.append(jnp.max(xb, axis=-1, keepdims=True))           # max pool, col 2b+1
    pooled = _pack_columns(cols)                                   # (C, 2B)

    y = _mlp_cols(pooled, w1_ref, w2_ref)                          # (C, 2B)

    # Per-batch mixing: att_b = sigmoid(y[:, 2b] + y[:, 2b+1]) via masked lane-sum
    # (avoids any lane slicing / transposes; att_b is (C, 1) -> lane broadcast).
    idx = jax.lax.broadcasted_iota(jnp.int32, y.shape, 1)
    for b in range(b_count):
        pair = (idx == 2 * b) | (idx == 2 * b + 1)
        att_b = jax.nn.sigmoid(
            jnp.sum(jnp.where(pair, y, 0.0), axis=-1, keepdims=True))   # (C, 1)
        o_ref[b] = (x_ref[b].astype(jnp.float32) * att_b).astype(o_ref.dtype)


def _per_batch_kernel(x_ref, w1_ref, w2_ref, o_ref):
    """One (C, HW) block per grid step; grid=(B,) marked parallel (megacore)."""
    x = x_ref[0].astype(jnp.float32)                               # (C, HW)
    hw = x.shape[-1]
    avg = jnp.sum(x, axis=-1, keepdims=True) * jnp.float32(1.0 / hw)
    mx = jnp.max(x, axis=-1, keepdims=True)
    pooled = _pack_columns([avg, mx])                              # (C, 2)
    y = _mlp_cols(pooled, w1_ref, w2_ref)                          # (C, 2)
    att = jax.nn.sigmoid(jnp.sum(y, axis=-1, keepdims=True))       # (C, 1)
    o_ref[0] = (x_ref[0].astype(jnp.float32) * att).astype(o_ref.dtype)


def _make_pool_mlp_kernel(hw_total, hw_tile):
    """HW-tiled phase 1: running sum/max over HW tiles, MLP+sigmoid on the last tile."""

    def kernel(x_ref, w1_ref, w2_ref, att_ref, sum_sc, max_sc):
        t = pl.program_id(1)

        @pl.when(t == 0)
        def _():
            sum_sc[...] = jnp.zeros_like(sum_sc)
            max_sc[...] = jnp.full_like(max_sc, -jnp.inf)

        x = x_ref[0].astype(jnp.float32)                           # (C, hw_tile)
        lane = jax.lax.broadcasted_iota(jnp.int32, x.shape, 1)
        valid = (t * hw_tile + lane) < hw_total                    # mask padded tail

        sum_sc[...] = sum_sc[...] + jnp.sum(
            jnp.where(valid, x, jnp.float32(0.0)), axis=-1, keepdims=True)
        max_sc[...] = jnp.maximum(
            max_sc[...],
            jnp.max(jnp.where(valid, x, jnp.float32(-jnp.inf)),
                    axis=-1, keepdims=True))

        @pl.when(t == pl.num_programs(1) - 1)
        def _():
            avg = sum_sc[...] * jnp.float32(1.0 / hw_total)
            pooled = _pack_columns([avg, max_sc[...]])             # (C, 2)
            y = _mlp_cols(pooled, w1_ref, w2_ref)                  # (C, 2)
            att_ref[0] = jax.nn.sigmoid(jnp.sum(y, axis=-1, keepdims=True))

    return kernel


def _apply_kernel(x_ref, att_ref, o_ref):
    """HW-tiled phase 2: streamed broadcast multiply, store in the I/O dtype."""
    o_ref[0] = (x_ref[0].astype(jnp.float32) * att_ref[0]).astype(o_ref.dtype)


# ------------------------------------------------------------------------- wrapper

def _channel_attention_tiled(x_flat, w1, w2, hw_tile, vmem_limit):
    B, C, HW = x_flat.shape
    Chid = w1.shape[0]
    itemsize = x_flat.dtype.itemsize
    T = pl.cdiv(HW, hw_tile)

    att = pl.pallas_call(
        _make_pool_mlp_kernel(HW, hw_tile),
        out_shape=jax.ShapeDtypeStruct((B, C, 1), jnp.float32),
        grid_spec=pltpu.PrefetchScalarGridSpec(
            num_scalar_prefetch=0,
            grid=(B, T),
            in_specs=[
                pl.BlockSpec((1, C, hw_tile), lambda b, t: (b, 0, t)),
                pl.BlockSpec((Chid, C), lambda b, t: (0, 0)),
                pl.BlockSpec((C, Chid), lambda b, t: (0, 0)),
            ],
            out_specs=pl.BlockSpec((1, C, 1), lambda b, t: (b, 0, 0)),
            scratch_shapes=[pltpu.VMEM((C, 1), jnp.float32),
                            pltpu.VMEM((C, 1), jnp.float32)],
        ),
        compiler_params=pltpu.CompilerParams(
            dimension_semantics=("parallel", "arbitrary"),
            vmem_limit_bytes=vmem_limit),
        cost_estimate=pl.CostEstimate(
            flops=2 * B * C * HW + 8 * B * C * Chid,
            transcendentals=B * C,
            bytes_accessed=B * C * HW * itemsize + 2 * C * Chid * 4 + B * C * 4),
    )(x_flat, w1, w2)

    out = pl.pallas_call(
        _apply_kernel,
        out_shape=jax.ShapeDtypeStruct((B, C, HW), x_flat.dtype),
        grid_spec=pltpu.PrefetchScalarGridSpec(
            num_scalar_prefetch=0,
            grid=(B, T),
            in_specs=[
                pl.BlockSpec((1, C, hw_tile), lambda b, t: (b, 0, t)),
                pl.BlockSpec((1, C, 1), lambda b, t: (b, 0, 0)),
            ],
            out_specs=pl.BlockSpec((1, C, hw_tile), lambda b, t: (b, 0, t)),
        ),
        compiler_params=pltpu.CompilerParams(
            dimension_semantics=("parallel", "parallel"),
            vmem_limit_bytes=vmem_limit),
        cost_estimate=pl.CostEstimate(
            flops=B * C * HW,
            transcendentals=0,
            bytes_accessed=2 * B * C * HW * itemsize + B * C * 4),
    )(x_flat, att)
    return out


def channel_attention(x_nchw, w1, w2, *, path=None, hw_tile=None):
    """x_nchw: (B, C, H, W) f32 or bf16. w1: (Chid, C), w2: (C, Chid) 1x1-conv weights."""
    B, C, H, W = x_nchw.shape
    HW = H * W
    Chid = w1.shape[0]

    w1 = w1.astype(jnp.float32)
    w2 = w2.astype(jnp.float32)

    # NCHW -> (B, C, HW): pure reshape, zero data movement.
    x_flat = x_nchw.reshape(B, C, HW)
    itemsize = x_flat.dtype.itemsize
    weight_bytes = 2 * C * Chid * 4

    # Generation-aware VMEM budget: ~75% of per-core capacity
    # (≈96 MiB on v5e/v6e with 128 MiB, ≈48 MiB on v7x with 64 MiB).
    budget = _vmem_capacity_bytes() * 3 // 4

    whole_bytes = B * C * HW * itemsize
    per_batch_bytes = C * HW * itemsize

    if path is None:
        if B <= 8 and whole_bytes <= (4 << 20):
            path = "single"          # tiny problem: one grid step, minimal overhead
        elif 4 * per_batch_bytes + weight_bytes + (2 << 20) <= budget:
            path = "per_batch"       # per-batch block still fits comfortably
        else:
            path = "tiled"           # large feature maps: bounded-VMEM two-phase

    if path == "tiled":
        if hw_tile is None:
            avail = max(budget - weight_bytes - (4 << 20), 4 * C * 128 * itemsize)
            hw_tile = avail // (4 * C * itemsize)          # x + out, double-buffered
            hw_tile = max(128, (hw_tile // 128) * 128)
            hw_tile = min(hw_tile, 4096, ((HW + 127) // 128) * 128)
        vmem_limit = int(min(budget,
                             max(8 << 20, 4 * C * hw_tile * itemsize
                                 + weight_bytes + (4 << 20))))
        out_flat = _channel_attention_tiled(x_flat, w1, w2, hw_tile, vmem_limit)
        return out_flat.reshape(B, C, H, W)

    cost = pl.CostEstimate(
        flops=3 * B * C * HW + 8 * B * C * Chid,
        transcendentals=B * C,
        bytes_accessed=2 * B * C * HW * itemsize + 2 * C * Chid * 4,
    )

    if path == "single":
        vmem_limit = int(min(budget,
                             max(8 << 20, 4 * whole_bytes + weight_bytes + (2 << 20))))
        out_flat = pl.pallas_call(
            _whole_batch_kernel,
            out_shape=jax.ShapeDtypeStruct((B, C, HW), x_flat.dtype),
            grid_spec=pltpu.PrefetchScalarGridSpec(
                num_scalar_prefetch=0,
                grid=(1,),
                in_specs=[
                    pl.BlockSpec((B, C, HW), lambda i: (0, 0, 0)),
                    pl.BlockSpec((Chid, C), lambda i: (0, 0)),
                    pl.BlockSpec((C, Chid), lambda i: (0, 0)),
                ],
                out_specs=pl.BlockSpec((B, C, HW), lambda i: (0, 0, 0)),
            ),
            compiler_params=pltpu.CompilerParams(
                dimension_semantics=("arbitrary",),
                vmem_limit_bytes=vmem_limit),
            cost_estimate=cost,
        )(x_flat, w1, w2)
    else:  # "per_batch"
        vmem_limit = int(min(budget,
                             max(8 << 20, 4 * per_batch_bytes + weight_bytes + (2 << 20))))
        out_flat = pl.pallas_call(
            _per_batch_kernel,
            out_shape=jax.ShapeDtypeStruct((B, C, HW), x_flat.dtype),
            grid_spec=pltpu.PrefetchScalarGridSpec(
                num_scalar_prefetch=0,
                grid=(B,),
                in_specs=[
                    pl.BlockSpec((1, C, HW), lambda b: (b, 0, 0)),
                    pl.BlockSpec((Chid, C), lambda b: (0, 0)),
                    pl.BlockSpec((C, Chid), lambda b: (0, 0)),
                ],
                out_specs=pl.BlockSpec((1, C, HW), lambda b: (b, 0, 0)),
            ),
            compiler_params=pltpu.CompilerParams(
                dimension_semantics=("parallel",),
                vmem_limit_bytes=vmem_limit),
            cost_estimate=cost,
        )(x_flat, w1, w2)

    return out_flat.reshape(B, C, H, W)


# ----------------------------------------------------------------------- reference

def channel_attention_ref(x, w1, w2):
    """Pure-JAX reference mirroring the PyTorch module (f32 accumulation)."""
    xf = x.astype(jnp.float32)
    w1 = w1.astype(jnp.float32)
    w2 = w2.astype(jnp.float32)
    avg = jnp.mean(xf, axis=(2, 3))          # (B, C)
    mx = jnp.max(xf, axis=(2, 3))            # (B, C)

    def mlp(v):  # v: (B, C)
        h = jnp.maximum(v @ w1.T, 0.0)       # (B, Chid)
        return h @ w2.T                      # (B, C)

    att = jax.nn.sigmoid(mlp(avg) + mlp(mx))[:, :, None, None]
    return xf * att


# ---------------------------------------------------------------------------- main

if __name__ == "__main__":
    # batch=2, channels=64, spatial=16x16, reduction_ratio=16 -> hidden=4
    B, C, H, W = 2, 64, 16, 16
    reduction_ratio = 16
    Chid = C // reduction_ratio

    key = jax.random.PRNGKey(0)
    kx, k1, k2, kx2 = jax.random.split(key, 4)

    x = jax.random.normal(kx, (B, C, H, W), dtype=jnp.float32)
    w1 = jax.random.normal(k1, (Chid, C), dtype=jnp.float32) * (1.0 / jnp.sqrt(C))
    w2 = jax.random.normal(k2, (C, Chid), dtype=jnp.float32) * (1.0 / jnp.sqrt(Chid))

    ref = channel_attention_ref(x, w1, w2)

    # 1) auto path ("single": whole batch in one grid step, packed (C, 2B) MLP), f32.
    out = jax.block_until_ready(channel_attention(x, w1, w2))
    assert out.shape == (B, C, H, W)
    assert jnp.allclose(out, ref, atol=1e-5, rtol=1e-5), "single-path mismatch"

    # 2) per-batch path (grid=(B,)), f32.
    out_pb = jax.block_until_ready(channel_attention(x, w1, w2, path="per_batch"))
    assert jnp.allclose(out_pb, ref, atol=1e-5, rtol=1e-5), "per-batch mismatch"

    # 3) bf16 I/O path (HBM traffic in bf16, f32 accumulation inside the kernel).
    x_bf = x.astype(jnp.bfloat16)
    out_bf = jax.block_until_ready(channel_attention(x_bf, w1, w2))
    ref_bf = channel_attention_ref(x_bf, w1, w2)
    assert out_bf.dtype == jnp.bfloat16
    assert jnp.allclose(out_bf.astype(jnp.float32), ref_bf, atol=3e-2, rtol=3e-2), \
        "bf16-path mismatch"

    # 4) HW-tiled two-phase path, forced with a small tile so the masked tail
    #    (HW = 225, not a multiple of 128) and the two-pass pipeline are exercised.
    H2, W2 = 15, 15
    x2 = jax.random.normal(kx2, (B, C, H2, W2), dtype=jnp.float32)
    out_t = jax.block_until_ready(
        channel_attention(x2, w1, w2, path="tiled", hw_tile=128))
    ref_t = channel_attention_ref(x2, w1, w2)
    assert jnp.allclose(out_t, ref_t, atol=1e-5, rtol=1e-5), "tiled-path mismatch"

    print("KERNEL_OK")
</pallas_src>

<mosaic_0001>
module attributes {stable_mosaic.version = 11 : i64} {
  func.func @_whole_batch_kernel(%arg0: i32, %arg1: memref<2x64x256xf32, #tpu.memory_space<vmem>>, %arg2: memref<4x64xf32, #tpu.memory_space<vmem>>, %arg3: memref<64x4xf32, #tpu.memory_space<vmem>>, %arg4: memref<2x64x256xf32, #tpu.memory_space<vmem>>) attributes {dimension_semantics = [#tpu.dimension_semantics<arbitrary>], iteration_bounds = array<i64: 1>, scalar_prefetch = 0 : i64, scratch_operands = 0 : i64, tpu.core_type = #tpu.core_type<tc>, window_params = [{pipeline_mode = #tpu.pipeline_mode<synchronous>, transform_indices = @transform_0, window_bounds = array<i64: 2, 64, 256>}, {pipeline_mode = #tpu.pipeline_mode<synchronous>, transform_indices = @transform_1, window_bounds = array<i64: 4, 64>}, {pipeline_mode = #tpu.pipeline_mode<synchronous>, transform_indices = @transform_2, window_bounds = array<i64: 64, 4>}, {pipeline_mode = #tpu.pipeline_mode<synchronous>, transform_indices = @transform_3, window_bounds = array<i64: 2, 64, 256>}]} {
    %c0 = arith.constant 0 : index
    %c0_0 = arith.constant 0 : index
    %c0_1 = arith.constant 0 : index
    %0 = vector.load %arg1[%c0, %c0_0, %c0_1] : memref<2x64x256xf32, #tpu.memory_space<vmem>>, vector<1x64x256xf32>
    %1 = vector.shape_cast %0 : vector<1x64x256xf32> to vector<64x256xf32>
    %cst = arith.constant dense<0.000000e+00> : vector<64xf32>
    %2 = vector.multi_reduction <add>, %1, %cst [1] : vector<64x256xf32> to vector<64xf32>
    %3 = vector.shape_cast %2 : vector<64xf32> to vector<64x1xf32>
    %cst_2 = arith.constant 3.906250e-03 : f32
    %4 = vector.broadcast %cst_2 : f32 to vector<64x1xf32>
    %5 = arith.mulf %3, %4 : vector<64x1xf32>
    %cst_3 = arith.constant dense<0xFF800000> : vector<64xf32>
    %6 = vector.multi_reduction <maximumf>, %1, %cst_3 [1] : vector<64x256xf32> to vector<64xf32>
    %7 = vector.shape_cast %6 : vector<64xf32> to vector<64x1xf32>
    %c1 = arith.constant 1 : index
    %c0_4 = arith.constant 0 : index
    %c0_5 = arith.constant 0 : index
    %8 = vector.load %arg1[%c1, %c0_4, %c0_5] : memref<2x64x256xf32, #tpu.memory_space<vmem>>, vector<1x64x256xf32>
    %9 = vector.shape_cast %8 : vector<1x64x256xf32> to vector<64x256xf32>
    %cst_6 = arith.constant dense<0.000000e+00> : vector<64xf32>
    %10 = vector.multi_reduction <add>, %9, %cst_6 [1] : vector<64x256xf32> to vector<64xf32>
    %11 = vector.shape_cast %10 : vector<64xf32> to vector<64x1xf32>
    %cst_7 = arith.constant 3.906250e-03 : f32
    %12 = vector.broadcast %cst_7 : f32 to vector<64x1xf32>
    %13 = arith.mulf %11, %12 : vector<64x1xf32>
    %cst_8 = arith.constant dense<0xFF800000> : vector<64xf32>
    %14 = vector.multi_reduction <maximumf>, %9, %cst_8 [1] : vector<64x256xf32> to vector<64xf32>
    %15 = vector.shape_cast %14 : vector<64xf32> to vector<64x1xf32>
    %16 = tpu.iota {dimensions = array<i32: 1>} : vector<64x4xi32>
    %cst_9 = arith.constant 0.000000e+00 : f32
    %17 = vector.broadcast %cst_9 : f32 to vector<64x4xf32>
    %c0_i32 = arith.constant 0 : i32
    %18 = vector.broadcast %c0_i32 : i32 to vector<64x4xi32>
    %19 = arith.cmpi eq, %16, %18 : vector<64x4xi32>
    %20 = vector.shape_cast %5 : vector<64x1xf32> to vector<64x1xf32>
    %21 = vector.broadcast %20 : vector<64x1xf32> to vector<64x4xf32>
    %22 = arith.select %19, %21, %17 : vector<64x4xi1>, vector<64x4xf32>
    %c1_i32 = arith.constant 1 : i32
    %23 = vector.broadcast %c1_i32 : i32 to vector<64x4xi32>
    %24 = arith.cmpi eq, %16, %23 : vector<64x4xi32>
    %25 = vector.shape_cast %7 : vector<64x1xf32> to vector<64x1xf32>
    %26 = vector.broadcast %25 : vector<64x1xf32> to vector<64x4xf32>
    %27 = arith.select %24, %26, %22 : vector<64x4xi1>, vector<64x4xf32>
    %c2_i32 = arith.constant 2 : i32
    %28 = vector.broadcast %c2_i32 : i32 to vector<64x4xi32>
    %29 = arith.cmpi eq, %16, %28 : vector<64x4xi32>
    %30 = vector.shape_cast %13 : vector<64x1xf32> to vector<64x1xf32>
    %31 = vector.broadcast %30 : vector<64x1xf32> to vector<64x4xf32>
    %32 = arith.select %29, %31, %27 : vector<64x4xi1>, vector<64x4xf32>
    %c3_i32 = arith.constant 3 : i32
    %33 = vector.broadcast %c3_i32 : i32 to vector<64x4xi32>
    %34 = arith.cmpi eq, %16, %33 : vector<64x4xi32>
    %35 = vector.shape_cast %15 : vector<64x1xf32> to vector<64x1xf32>
    %36 = vector.broadcast %35 : vector<64x1xf32> to vector<64x4xf32>
    %37 = arith.select %34, %36, %32 : vector<64x4xi1>, vector<64x4xf32>
    %c0_10 = arith.constant 0 : index
    %c0_11 = arith.constant 0 : index
    %38 = vector.load %arg2[%c0_10, %c0_11] : memref<4x64xf32, #tpu.memory_space<vmem>>, vector<4x64xf32>
    %cst_12 = arith.constant dense<0.000000e+00> : vector<4x4xf32>
    %39 = tpu.matmul %38, %37, %cst_12 {dimension_numbers = #tpu.dot_dimension_numbers<[1], [0], [0], [1], [0, 0, 1, 1], [], []>} : vector<4x64xf32>, vector<64x4xf32>, vector<4x4xf32> -> vector<4x4xf32>
    %cst_13 = arith.constant 0.000000e+00 : f32
    %40 = vector.broadcast %cst_13 : f32 to vector<4x4xf32>
    %41 = arith.maximumf %39, %40 : vector<4x4xf32>
    %c0_14 = arith.constant 0 : index
    %c0_15 = arith.constant 0 : index
    %42 = vector.load %arg3[%c0_14, %c0_15] : memref<64x4xf32, #tpu.memory_space<vmem>>, vector<64x4xf32>
    %cst_16 = arith.constant dense<0.000000e+00> : vector<64x4xf32>
    %43 = tpu.matmul %42, %41, %cst_16 {dimension_numbers = #tpu.dot_dimension_numbers<[1], [0], [0], [1], [0, 0, 1, 1], [], []>} : vector<64x4xf32>, vector<4x4xf32>, vector<64x4xf32> -> vector<64x4xf32>
    %44 = tpu.iota {dimensions = array<i32: 1>} : vector<64x4xi32>
    %c0_i32_17 = arith.constant 0 : i32
    %45 = vector.broadcast %c0_i32_17 : i32 to vector<64x4xi32>
    %46 = arith.cmpi eq, %44, %45 : vector<64x4xi32>
    %c1_i32_18 = arith.constant 1 : i32
    %47 = vector.broadcast %c1_i32_18 : i32 to vector<64x4xi32>
    %48 = arith.cmpi eq, %44, %47 : vector<64x4xi32>
    %49 = arith.ori %46, %48 : vector<64x4xi1>
    %cst_19 = arith.constant 0.000000e+00 : f32
    %50 = vector.broadcast %cst_19 : f32 to vector<64x4xf32>
    %51 = arith.select %49, %43, %50 : vector<64x4xi1>, vector<64x4xf32>
    %cst_20 = arith.constant dense<0.000000e+00> : vector<64xf32>
    %52 = vector.multi_reduction <add>, %51, %cst_20 [1] : vector<64x4xf32> to vector<64xf32>
    %53 = vector.shape_cast %52 : vector<64xf32> to vector<64x1xf32>
    %54 = arith.negf %53 : vector<64x1xf32>
    %55 = math.exp %54 : vector<64x1xf32>
    %cst_21 = arith.constant 1.000000e+00 : f32
    %56 = vector.broadcast %cst_21 : f32 to vector<64x1xf32>
    %57 = arith.addf %56, %55 : vector<64x1xf32>
    %58 = arith.divf %56, %57 : vector<64x1xf32>
    %c0_22 = arith.constant 0 : index
    %c0_23 = arith.constant 0 : index
    %c0_24 = arith.constant 0 : index
    %59 = vector.load %arg1[%c0_22, %c0_23, %c0_24] : memref<2x64x256xf32, #tpu.memory_space<vmem>>, vector<1x64x256xf32>
    %60 = vector.shape_cast %59 : vector<1x64x256xf32> to vector<64x256xf32>
    %61 = vector.broadcast %58 : vector<64x1xf32> to vector<64x256xf32>
    %62 = arith.mulf %60, %61 : vector<64x256xf32>
    %c0_25 = arith.constant 0 : index
    %c0_26 = arith.constant 0 : index
    %c0_27 = arith.constant 0 : index
    %63 = vector.load %arg4[%c0_25, %c0_26, %c0_27] : memref<2x64x256xf32, #tpu.memory_space<vmem>>, vector<1x64x256xf32>
    %64 = vector.shape_cast %63 : vector<1x64x256xf32> to vector<64x256xf32>
    %65 = vector.shape_cast %62 : vector<64x256xf32> to vector<1x64x256xf32>
    tpu.vector_store %arg4[%c0_25, %c0_26, %c0_27], %65 {strides = array<i32>} : memref<2x64x256xf32, #tpu.memory_space<vmem>>, vector<1x64x256xf32>,
    %c2_i32_28 = arith.constant 2 : i32
    %66 = vector.broadcast %c2_i32_28 : i32 to vector<64x4xi32>
    %67 = arith.cmpi eq, %44, %66 : vector<64x4xi32>
    %c3_i32_29 = arith.constant 3 : i32
    %68 = vector.broadcast %c3_i32_29 : i32 to vector<64x4xi32>
    %69 = arith.cmpi eq, %44, %68 : vector<64x4xi32>
    %70 = arith.ori %67, %69 : vector<64x4xi1>
    %cst_30 = arith.constant 0.000000e+00 : f32
    %71 = vector.broadcast %cst_30 : f32 to vector<64x4xf32>
    %72 = arith.select %70, %43, %71 : vector<64x4xi1>, vector<64x4xf32>
    %cst_31 = arith.constant dense<0.000000e+00> : vector<64xf32>
    %73 = vector.multi_reduction <add>, %72, %cst_31 [1] : vector<64x4xf32> to vector<64xf32>
    %74 = vector.shape_cast %73 : vector<64xf32> to vector<64x1xf32>
    %75 = arith.negf %74 : vector<64x1xf32>
    %76 = math.exp %75 : vector<64x1xf32>
    %cst_32 = arith.constant 1.000000e+00 : f32
    %77 = vector.broadcast %cst_32 : f32 to vector<64x1xf32>
    %78 = arith.addf %77, %76 : vector<64x1xf32>
    %79 = arith.divf %77, %78 : vector<64x1xf32>
    %c1_33 = arith.constant 1 : index
    %c0_34 = arith.constant 0 : index
    %c0_35 = arith.constant 0 : index
    %80 = vector.load %arg1[%c1_33, %c0_34, %c0_35] : memref<2x64x256xf32, #tpu.memory_space<vmem>>, vector<1x64x256xf32>
    %81 = vector.shape_cast %80 : vector<1x64x256xf32> to vector<64x256xf32>
    %82 = vector.broadcast %79 : vector<64x1xf32> to vector<64x256xf32>
    %83 = arith.mulf %81, %82 : vector<64x256xf32>
    %c1_36 = arith.constant 1 : index
    %c0_37 = arith.constant 0 : index
    %c0_38 = arith.constant 0 : index
    %84 = vector.load %arg4[%c1_36, %c0_37, %c0_38] : memref<2x64x256xf32, #tpu.memory_space<vmem>>, vector<1x64x256xf32>
    %85 = vector.shape_cast %84 : vector<1x64x256xf32> to vector<64x256xf32>
    %86 = vector.shape_cast %83 : vector<64x256xf32> to vector<1x64x256xf32>
    tpu.vector_store %arg4[%c1_36, %c0_37, %c0_38], %86 {strides = array<i32>} : memref<2x64x256xf32, #tpu.memory_space<vmem>>, vector<1x64x256xf32>,
    return
  }
  func.func @transform_0(%arg0: i32) -> (i32, i32, i32) {
    %c0_i32 = arith.constant 0 : i32
    %c0_i32_0 = arith.constant 0 : i32
    %c0_i32_1 = arith.constant 0 : i32
    %c0_i32_2 = arith.constant 0 : i32
    return %c0_i32, %c0_i32_0, %c0_i32_1 : i32, i32, i32
  }
  func.func @transform_1(%arg0: i32) -> (i32, i32) {
    %c0_i32 = arith.constant 0 : i32
    %c0_i32_0 = arith.constant 0 : i32
    %c0_i32_1 = arith.constant 0 : i32
    return %c0_i32, %c0_i32_0 : i32, i32
  }
  func.func @transform_2(%arg0: i32) -> (i32, i32) {
    %c0_i32 = arith.constant 0 : i32
    %c0_i32_0 = arith.constant 0 : i32
    %c0_i32_1 = arith.constant 0 : i32
    return %c0_i32, %c0_i32_0 : i32, i32
  }
  func.func @transform_3(%arg0: i32) -> (i32, i32, i32) {
    %c0_i32 = arith.constant 0 : i32
    %c0_i32_0 = arith.constant 0 : i32
    %c0_i32_1 = arith.constant 0 : i32
    %c0_i32_2 = arith.constant 0 : i32
    return %c0_i32, %c0_i32_0, %c0_i32_1 : i32, i32, i32
  }
}

</mosaic_0001>

<bundles_post_ra>
// kernel: tpu_custom_call.1
= control target key start
LH: loop header
LB: loop body
LE: loop exit
PB: predicated region body
PF: predicated region fallthrough
CT: control target
= control target key end

     0   :  { %8 = vsyncpa [#allocation3], 0  ;;  %s1257_s0 = inlined_call_operand.hbm [shape: f32[2,64,256], index: 0, kind: input, shape index: {}]   ;;  %s1258_s1 = inlined_call_operand.vmem [shape: f32[4,64], index: 1, kind: input, shape index: {}]   ;;  %s1259_s2 = inlined_call_operand.vmem [shape: f32[64,4], index: 2, kind: input, shape index: {}]   ;;  %s1260_s3 = inlined_call_operand.hbm [shape: f32[2,64,256], index: 3, kind: output, shape index: {}]  }
   0x1   :  { %9 = vsyncpa [#allocation4], 0  ;;  %s881_s12 = smov [#allocation2]  }
   0x2   :  { %s15_s13 = sshll.u32 %s881_s12, 4  ;;  %s16_s13 = int_to_ptr.vmem [resolvable:$true] %s15_s13 }
   0x3   :  { %s845_s14 = scalar_lea.vmem %s16_s13, 4096  ;;  %p850_p1 = scmp.lt.s32.totalorder %s16_s13, %s16_s13 }
   0x4   :  { %p846_p0 = scmp.ne.s32.totalorder %s16_s13, %s845_s14  ;;  %p851_p2 = scmp.lt.s32.totalorder %s845_s14, %s845_s14 }
   0x6   :  { %p852_p3 = por %p851_p2, %p850_p1 }
   0x8   :  { %p853_p4 = pnand %p852_p3, %p846_p0 }
   0xa   :  { %856 = shalt.err (!%p853_p4)
}
   0xb   :  { %s882_s15 = smov 256   ;;  %s883_s16 = smov 16  }
   0xc   :  { %21 = dma.hbm_to_vmem [thread:$0]  %s1257_s0, 4096, %s16_s13, [#allocation3], %s882_s15, %s882_s15, %s883_s16  }
   0xd   :  { %877 = dma.done.wait [#allocation3], 4096  }
   0xe   :  { %878 = vsyncadd [#allocation3], 4294963200  ;;  %v913_v0 = vld [vmem:[#allocation2 + $0xf0] sm:$0xff]  ;;  %v915_v1 = vld [vmem:[#allocation2 + $0xf8] sm:$0xff]  ;;  %v884_v32 = vmov 0.0   ;;  %vm885_vm0 = vmmov 0  }
   0xf   :  { %v917_v2 = vld [vmem:[#allocation2 + $0x70] sm:$0xff]  ;;  %v139_v3 = vadd.f32 %v915_v1, %v913_v0  ;;  %v921_v4 = vld [vmem:[#allocation2 + $0x78] sm:$0xff]  ;;  %v923_v5 = vld [vmem:[#allocation2 + $0x60] sm:$0xff]  ;;  %v171_v16 = vmax.f32 %v913_v0, %v915_v1  ;;  %734 = vmatprep.subr.mxu0 %v884_v32  ;;  %750 = vmatprep.mubr.msk.f32.mxu0 %vm885_vm0, %v884_v32  ;;  %vm213_vm5 = vcmask 523264   ;;  %vm296_vm6 = vcmask 31744  }
  0x10   :  { %v925_v6 = vld [vmem:[#allocation2 + $0x68] sm:$0xff]  ;;  %v66_v7 = vadd.f32 %v921_v4, %v917_v2  ;;  %v98_v8 = vmax.f32 %v917_v2, %v921_v4  ;;  %v933_v10 = vld [vmem:[#allocation2 + $0xe0] sm:$0xff]  ;;  %v937_v12 = vld [vmem:[#allocation2 + $0x50] sm:$0xff]  ;;  %vm321_vm7 = vcmask 1043456  }
  0x11   :  { %140 = vadd.xlane.f32.xlu1 %v139_v3  ;;  %v63_v9 = vadd.f32 %v925_v6, %v923_v5  ;;  %v935_v11 = vld [vmem:[#allocation2 + $0xe8] sm:$0xff]  ;;  %v939_v13 = vld [vmem:[#allocation2 + $0x58] sm:$0xff]  ;;  %v95_v17 = vmax.f32 %v923_v5, %v925_v6  ;;  %v949_v18 = vld [vmem:[#allocation2 + $0xd0] sm:$0xff] }
  0x12   :  { %67 = vadd.xlane.f32.xlu0 %v66_v7  ;;  %v136_v14 = vadd.f32 %v935_v11, %v933_v10  ;;  %v60_v15 = vadd.f32 %v939_v13, %v937_v12  ;;  %v951_v19 = vld [vmem:[#allocation2 + $0xd8] sm:$0xff]  ;;  %v953_v20 = vld [vmem:[#allocation2 + $0x40] sm:$0xff]  ;;  %v955_v21 = vld [vmem:[#allocation2 + $0x48] sm:$0xff]  ;;  %v168_v24 = vmax.f32 %v933_v10, %v935_v11  ;;  %v92_v25 = vmax.f32 %v937_v12, %v939_v13 }
  0x13   :  { %v133_v22 = vadd.f32 %v951_v19, %v949_v18  ;;  %v57_v23 = vadd.f32 %v955_v21, %v953_v20  ;;  %v965_v26 = vld [vmem:[#allocation2 + $0xc0] sm:$0xff]  ;;  %v967_v27 = vld [vmem:[#allocation2 + $0xc8] sm:$0xff]  ;;  %v969_v28 = vld [vmem:[#allocation2 + $0x30] sm:$0xff]  ;;  %v165_v33 = vmax.f32 %v949_v18, %v951_v19  ;;  %v89_v34 = vmax.f32 %v953_v20, %v955_v21 }
  0x14   :  { %v971_v29 = vld [vmem:[#allocation2 + $0x38] sm:$0xff]  ;;  %v130_v30 = vadd.f32 %v967_v27, %v965_v26  ;;  %v982_v35 = vld [vmem:[#allocation2 + $0xb0] sm:$0xff]  ;;  %v986_v37 = vld [vmem:[#allocation2 + $0x20] sm:$0xff]  ;;  %v162_v41 = vmax.f32 %v965_v26, %v967_v27  ;;  %v174_v7 = vlaneseq }
  0x15   :  { %99 = vmax.xlane.f32.xlu1 %v98_v8  ;;  %v54_v31 = vadd.f32 %v971_v29, %v969_v28  ;;  %v984_v36 = vld [vmem:[#allocation2 + $0xb8] sm:$0xff]  ;;  %v988_v38 = vld [vmem:[#allocation2 + $0x28] sm:$0xff]  ;;  %v86_v42 = vmax.f32 %v969_v28, %v971_v29  ;;  %v998_v43 = vld [vmem:[#allocation2 + $0xa0] sm:$0xff] }
  0x16   :  { %64 = vadd.xlane.f32.xlu0 %v63_v9  ;;  %v127_v39 = vadd.f32 %v984_v36, %v982_v35  ;;  %v51_v40 = vadd.f32 %v988_v38, %v986_v37  ;;  %v1000_v44 = vld [vmem:[#allocation2 + $0xa8] sm:$0xff]  ;;  %v1002_v45 = vld [vmem:[#allocation2 + $0x10] sm:$0xff]  ;;  %v1004_v46 = vld [vmem:[#allocation2 + $0x18] sm:$0xff]  ;;  %v159_v49 = vmax.f32 %v982_v35, %v984_v36  ;;  %v83_v50 = vmax.f32 %v986_v37, %v988_v38 }
  0x17   :  { %v124_v47 = vadd.f32 %v1000_v44, %v998_v43  ;;  %v48_v48 = vadd.f32 %v1004_v46, %v1002_v45  ;;  %v1014_v51 = vld [vmem:[#allocation2 + $0x90] sm:$0xff]  ;;  %v1016_v52 = vld [vmem:[#allocation2 + $0x98] sm:$0xff]  ;;  %v1018_v53 = vld [vmem:[#allocation2] sm:$0xff]  ;;  %v156_v57 = vmax.f32 %v998_v43, %v1000_v44  ;;  %v80_v58 = vmax.f32 %v1002_v45, %v1004_v46 }
  0x18   :  { %v1020_v54 = vld [vmem:[#allocation2 + $0x8] sm:$0xff]  ;;  %v121_v55 = vadd.f32 %v1016_v52, %v1014_v51  ;;  %v1030_v59 = vld [vmem:[#allocation2 + $0x80] sm:$0xff]  ;;  %v153_v3 = vmax.f32 %v1014_v51, %v1016_v52  ;;  %v1043_v8 = vand.u32 127, %v174_v7 }
  0x19   :  { %137 = vadd.xlane.f32.xlu1 %v136_v14  ;;  %v45_v56 = vadd.f32 %v1020_v54, %v1018_v53  ;;  %v1032_v60 = vld [vmem:[#allocation2 + $0x88] sm:$0xff]  ;;  %v77_v61 = vmax.f32 %v1018_v53, %v1020_v54 }
  0x1a   :  { %61 = vadd.xlane.f32.xlu0 %v60_v15  ;;  %v118_v62 = vadd.f32 %v1032_v60, %v1030_v59  ;;  %v150_v63 = vmax.f32 %v1030_v59, %v1032_v60  ;;  %vm176_vm1 = vcmp.eq.s32.totalorder %v1043_v8, 0  ;;  %vm185_vm2 = vcmp.eq.s32.totalorder %v1043_v8, 1 }
  0x1b   :  { %vm194_vm3 = vcmp.eq.s32.totalorder %v1043_v8, 2  ;;  %vm203_vm4 = vcmp.eq.s32.totalorder %v1043_v8, 3  ;;  %vm1159_vm8 = vmor %vm176_vm1, %vm185_vm2 }
  0x1c   :  { %vm1167_vm9 = vmor %vm194_vm3, %vm203_vm4 }
  0x1d   :  { %172 = vmax.xlane.f32.xlu1 %v171_v16 }
  0x1e   :  { %96 = vmax.xlane.f32.xlu0 %v95_v17 }
  0x21   :  { %134 = vadd.xlane.f32.xlu1 %v133_v22 }
  0x22   :  { %58 = vadd.xlane.f32.xlu0 %v57_v23 }
  0x25   :  { %169 = vmax.xlane.f32.xlu1 %v168_v24 }
  0x26   :  { %93 = vmax.xlane.f32.xlu0 %v92_v25 }
  0x29   :  { %131 = vadd.xlane.f32.xlu1 %v130_v30 }
  0x2a   :  { %55 = vadd.xlane.f32.xlu0 %v54_v31 }
  0x2d   :  { %166 = vmax.xlane.f32.xlu1 %v165_v33 }
  0x2e   :  { %90 = vmax.xlane.f32.xlu0 %v89_v34 }
  0x31   :  { %128 = vadd.xlane.f32.xlu1 %v127_v39 }
  0x32   :  { %52 = vadd.xlane.f32.xlu0 %v51_v40 }
  0x35   :  { %163 = vmax.xlane.f32.xlu1 %v162_v41 }
  0x36   :  { %87 = vmax.xlane.f32.xlu0 %v86_v42 }
  0x39   :  { %125 = vadd.xlane.f32.xlu1 %v124_v47 }
  0x3a   :  { %49 = vadd.xlane.f32.xlu0 %v48_v48 }
  0x3d   :  { %160 = vmax.xlane.f32.xlu1 %v159_v49 }
  0x3e   :  { %84 = vmax.xlane.f32.xlu0 %v83_v50 }
  0x41   :  { %122 = vadd.xlane.f32.xlu1 %v121_v55 }
  0x42   :  { %46 = vadd.xlane.f32.xlu0 %v45_v56 }
  0x45   :  { %157 = vmax.xlane.f32.xlu1 %v156_v57 }
  0x46   :  { %81 = vmax.xlane.f32.xlu0 %v80_v58 }
  0x49   :  { %78 = vmax.xlane.f32.xlu1 %v77_v61 }
  0x4a   :  { %119 = vadd.xlane.f32.xlu0 %v118_v62 }
  0x4d   :  { %151 = vmax.xlane.f32.xlu1 %v150_v63 }
  0x4e   :  { %154 = vmax.xlane.f32.xlu0 %v153_v3 }
  0x9a   :  { %v141_v9 = vpop.xlane.xlu1 %140 }
  0x9b   :  { %v68_v14 = vpop.xlane.xlu0 %67  ;;  %v149_v23 = vmul.f32 0.00390625, %v141_v9 }
  0x9c   :  { %v76_v15 = vmul.f32 0.00390625, %v68_v14 }
  0x9e   :  { %v100_v16 = vpop.xlane.xlu1 %99  ;;  %v184_v22 = vsel %vm176_vm1, %v76_v15, 0.0 }
  0x9f   :  { %v65_v17 = vpop.xlane.xlu0 %64  ;;  %v193_v25 = vsel %vm185_vm2, %v100_v16, %v184_v22 }
  0xa0   :  { %v75_v31 = vmul.f32 0.00390625, %v65_v17  ;;  %v202_v34 = vsel %vm194_vm3, %v149_v23, %v193_v25 }
  0xa2   :  { %v138_v24 = vpop.xlane.xlu1 %137  ;;  %v183_v41 = vsel %vm176_vm1, %v75_v31, 0.0 }
  0xa3   :  { %v62_v30 = vpop.xlane.xlu0 %61  ;;  %v148_v42 = vmul.f32 0.00390625, %v138_v24 }
  0xa4   :  { %v74_v50 = vmul.f32 0.00390625, %v62_v30 }
  0xa6   :  { %v173_v33 = vpop.xlane.xlu1 %172  ;;  %v182_v61 = vsel %vm176_vm1, %v74_v50, 0.0 }
  0xa7   :  { %v97_v39 = vpop.xlane.xlu0 %96  ;;  %v211_v40 = vsel %vm203_vm4, %v173_v33, %v202_v34 }
  0xa8   :  { %735 = vmatpush3.msra.mxu0 %v211_v40  ;;  %v192_v48 = vsel %vm185_vm2, %v97_v39, %v183_v41 }
  0xa9   :  { %736 = vmatprep.subr.mxu0 %v884_v32  ;;  %v201_v56 = vsel %vm194_vm3, %v148_v42, %v192_v48 }
  0xaa   :  { %v135_v47 = vpop.xlane.xlu1 %134 }
  0xab   :  { %v59_v49 = vpop.xlane.xlu0 %58  ;;  %v147_v62 = vmul.f32 0.00390625, %v135_v47 }
  0xac   :  { %v73_v9 = vmul.f32 0.00390625, %v59_v49 }
  0xae   :  { %v170_v55 = vpop.xlane.xlu1 %169  ;;  %v181_v22 = vsel %vm176_vm1, %v73_v9, 0.0 }
  0xaf   :  { %v94_v57 = vpop.xlane.xlu0 %93  ;;  %v210_v58 = vsel %vm203_vm4, %v170_v55, %v201_v56 }
  0xb0   :  { %737 = vmatpush3.msra.mxu0 %v210_v58  ;;  %v191_v3 = vsel %vm185_vm2, %v94_v57, %v182_v61 }
  0xb1   :  { %738 = vmatprep.subr.mxu0 %v884_v32  ;;  %v200_v15 = vsel %vm194_vm3, %v147_v62, %v191_v3 }
  0xb2   :  { %v132_v63 = vpop.xlane.xlu1 %131 }
  0xb3   :  { %v56_v7 = vpop.xlane.xlu0 %55  ;;  %v146_v23 = vmul.f32 0.00390625, %v132_v63 }
  0xb4   :  { %v72_v31 = vmul.f32 0.00390625, %v56_v7 }
  0xb6   :  { %v167_v14 = vpop.xlane.xlu1 %166  ;;  %v180_v41 = vsel %vm176_vm1, %v72_v31, 0.0 }
  0xb7   :  { %v91_v16 = vpop.xlane.xlu0 %90  ;;  %v209_v17 = vsel %vm203_vm4, %v167_v14, %v200_v15 }
  0xb8   :  { %739 = vmatpush3.msra.mxu0 %v209_v17  ;;  %v190_v25 = vsel %vm185_vm2, %v91_v16, %v181_v22 }
  0xb9   :  { %740 = vmatprep.subr.mxu0 %v884_v32  ;;  %v199_v34 = vsel %vm194_vm3, %v146_v23, %v190_v25 }
  0xba   :  { %v129_v24 = vpop.xlane.xlu1 %128 }
  0xbb   :  { %v53_v30 = vpop.xlane.xlu0 %52  ;;  %v145_v42 = vmul.f32 0.00390625, %v129_v24 }
  0xbc   :  { %v71_v50 = vmul.f32 0.00390625, %v53_v30 }
  0xbe   :  { %v164_v33 = vpop.xlane.xlu1 %163  ;;  %v179_v61 = vsel %vm176_vm1, %v71_v50, 0.0 }
  0xbf   :  { %v88_v39 = vpop.xlane.xlu0 %87  ;;  %v208_v40 = vsel %vm203_vm4, %v164_v33, %v199_v34 }
  0xc0   :  { %741 = vmatpush3.msra.mxu0 %v208_v40  ;;  %v189_v48 = vsel %vm185_vm2, %v88_v39, %v180_v41 }
  0xc1   :  { %742 = vmatprep.subr.mxu0 %v884_v32  ;;  %v198_v56 = vsel %vm194_vm3, %v145_v42, %v189_v48 }
  0xc2   :  { %v126_v47 = vpop.xlane.xlu1 %125 }
  0xc3   :  { %v50_v49 = vpop.xlane.xlu0 %49  ;;  %v144_v62 = vmul.f32 0.00390625, %v126_v47 }
  0xc4   :  { %v70_v15 = vmul.f32 0.00390625, %v50_v49  ;;  %v212_v49 = vld [vmem:[%s1258_s1] sm:$0xf] }
  0xc6   :  { %v161_v55 = vpop.xlane.xlu1 %160  ;;  %v178_v24 = vsel %vm176_vm1, %v70_v15, 0.0 }
  0xc7   :  { %v85_v57 = vpop.xlane.xlu0 %84  ;;  %v207_v58 = vsel %vm203_vm4, %v161_v55, %v198_v56  ;;  %v288_v55 = vld [vmem:[%s1259_s2] sm:$0xff] }
  0xc8   :  { %743 = vmatpush3.msra.mxu0 %v207_v58  ;;  %v188_v3 = vsel %vm185_vm2, %v85_v57, %v179_v61  ;;  %755 = vmatprep.mubr.msk.f32.mxu1 %vm296_vm6, %v288_v55  ;;  %v290_v61 = vld [vmem:[%s1259_s2 + $0x10] sm:$0xff] }
  0xc9   :  { %744 = vmatprep.subr.mxu0 %v884_v32  ;;  %v197_v14 = vsel %vm194_vm3, %v144_v62, %v188_v3  ;;  %v291_v62 = vld [vmem:[%s1259_s2 + $0x18] sm:$0xff]  ;;  %v293_v3 = vld [vmem:[%s1259_s2 + $0x28] sm:$0xff] }
  0xca   :  { %v123_v63 = vpop.xlane.xlu1 %122 }
  0xcb   :  { %v47_v7 = vpop.xlane.xlu0 %46  ;;  %v143_v25 = vmul.f32 0.00390625, %v123_v63  ;;  %v292_v63 = vld [vmem:[%s1259_s2 + $0x20] sm:$0xff] }
  0xcc   :  { %v69_v16 = vmul.f32 0.00390625, %v47_v7  ;;  %v294_v7 = vld [vmem:[%s1259_s2 + $0x30] sm:$0xff] }
  0xce   :  { %v158_v9 = vpop.xlane.xlu1 %157  ;;  %v177_v30 = vsel %vm176_vm1, %v69_v16, 0.0 }
  0xcf   :  { %v82_v17 = vpop.xlane.xlu0 %81  ;;  %v206_v22 = vsel %vm203_vm4, %v158_v9, %v197_v14  ;;  %v295_v9 = vld [vmem:[%s1259_s2 + $0x38] sm:$0xff] }
  0xd0   :  { %745 = vmatpush3.msra.mxu0 %v206_v22  ;;  %v187_v33 = vsel %vm185_vm2, %v82_v17, %v178_v24 }
  0xd1   :  { %746 = vmatprep.subr.mxu0 %v884_v32  ;;  %v196_v42 = vsel %vm194_vm3, %v143_v25, %v187_v33 }
  0xd2   :  { %v79_v23 = vpop.xlane.xlu1 %78 }
  0xd3   :  { %v120_v31 = vpop.xlane.xlu0 %119  ;;  %v186_v34 = vsel %vm185_vm2, %v79_v23, %v177_v30 }
  0xd4   :  { %v142_v39 = vmul.f32 0.00390625, %v120_v31 }
  0xd6   :  { %v152_v40 = vpop.xlane.xlu1 %151  ;;  %v195_v47 = vsel %vm194_vm3, %v142_v39, %v186_v34 }
  0xd7   :  { %v155_v41 = vpop.xlane.xlu0 %154  ;;  %v204_v50 = vsel %vm203_vm4, %v152_v40, %v195_v47 }
  0xd8   :  { %v205_v48 = vsel %vm203_vm4, %v155_v41, %v196_v42 }
  0xd9   :  { %747 = vmatpush3.msra.mxu0 %v205_v48 }
  0xda   :  { %748 = vmatprep.subr.mxu0 %v884_v32  ;;  %v289_v32 = vld [vmem:[%s1259_s2 + $0x8] sm:$0xff]  ;;  %s886_s2 = smov [#allocation5]  }
  0xdb   :  { %749 = vmatpush3.msra.mxu0 %v204_v50  ;;  %s678_s8 = sshll.u32 %s886_s2, 4  ;;  %s679_s8 = int_to_ptr.vmem [resolvable:$true] %s678_s8 }
  0xdc   :  { %751 = vmatmul.mubr.msk.f32.vlgmr.msra.gmra.mxu0 %vm213_vm5, %v212_v49  ;;  %s857_s9 = scalar_lea.vmem %s679_s8, 4096  ;;  %p862_p6 = scmp.lt.s32.totalorder %s679_s8, %s679_s8 }
  0xdd   :  { %p858_p5 = scmp.ne.s32.totalorder %s679_s8, %s857_s9  ;;  %p863_p7 = scmp.lt.s32.totalorder %s857_s9, %s857_s9 }
  0xdf   :  { %p864_p8 = por %p863_p7, %p862_p6 }
  0xe1   :  { %p865_p9 = pnand %p864_p8, %p858_p5 }
 0x19c   :  { %v283_v56 = vpop.f32.mrf.mxu0 }
 0x19d   :  { %v287_v57 = vmax.f32 %v283_v56, 0.0 }
 0x19e   :  { %v752_v58 = vpop.f32.mrf.mxu0 }
 0x19f   :  { %753 = vmatprep.subr.msk.mxu1 %vm321_vm7, %v287_v57 }
 0x1a0   :  { %754 = vmatpush3.msk.msra.mxu1 %vm321_vm7, %v287_v57 }
 0x1a1   :  { %756 = vmatmul.mubr.msk.f32.vlgmr.msra.gmra.mxu1 %vm296_vm6, %v289_v32 }
 0x1a2   :  { %758 = vmatprep.mubr.msk.f32.mxu1 %vm296_vm6, %v290_v61 }
 0x1a5   :  { %759 = vmatmul.mubr.msk.f32.gmra.mxu1 %vm296_vm6, %v291_v62 }
 0x1a6   :  { %761 = vmatprep.mubr.msk.f32.mxu1 %vm296_vm6, %v292_v63 }
 0x1a9   :  { %762 = vmatmul.mubr.msk.f32.gmra.mxu1 %vm296_vm6, %v293_v3 }
 0x1aa   :  { %764 = vmatprep.mubr.msk.f32.mxu1 %vm296_vm6, %v294_v7 }
 0x1ad   :  { %765 = vmatmul.mubr.msk.f32.gmra.mxu1 %vm296_vm6, %v295_v9 }
 0x261   :  { %v757_v15 = vpop.f32.mrf.mxu1 }
 0x262   :  { %v432_v17 = vsel %vm1159_vm8, %v757_v15, 0.0  ;;  %v545_v25 = vsel %vm1167_vm9, %v757_v15, 0.0 }
 0x263   :  { %v391_v22 = vpop.f32.mrf.mxu1  ;;  %v442_v23 = vsel %vm296_vm6, %v432_v17, 0.0  ;;  %v555_v34 = vsel %vm296_vm6, %v545_v25, 0.0 }
 0x264   :  { %443 = vadd.xlane.f32.xlu1 %v442_v23  ;;  %v431_v24 = vsel %vm1159_vm8, %v391_v22, 0.0  ;;  %v544_v31 = vsel %vm1167_vm9, %v391_v22, 0.0 }
 0x265   :  { %v439_v30 = vsel %vm296_vm6, %v431_v24, 0.0  ;;  %v760_v8 = vpop.f32.mrf.mxu1  ;;  %v552_v40 = vsel %vm296_vm6, %v544_v31, 0.0 }
 0x266   :  { %440 = vadd.xlane.f32.xlu0 %v439_v30  ;;  %v434_v33 = vsel %vm1159_vm8, %v760_v8, 0.0  ;;  %v547_v48 = vsel %vm1167_vm9, %v760_v8, 0.0 }
 0x267   :  { %v401_v39 = vpop.f32.mrf.mxu1  ;;  %v448_v41 = vsel %vm296_vm6, %v434_v33, 0.0  ;;  %v561_v56 = vsel %vm296_vm6, %v547_v48, 0.0 }
 0x268   :  { %556 = vadd.xlane.f32.xlu1 %v555_v34  ;;  %v433_v42 = vsel %vm1159_vm8, %v401_v39, 0.0  ;;  %v546_v50 = vsel %vm1167_vm9, %v401_v39, 0.0 }
 0x269   :  { %v763_v47 = vpop.f32.mrf.mxu1  ;;  %v445_v49 = vsel %vm296_vm6, %v433_v42, 0.0  ;;  %v558_v58 = vsel %vm296_vm6, %v546_v50, 0.0 }
 0x26a   :  { %553 = vadd.xlane.f32.xlu0 %v552_v40  ;;  %v436_v55 = vsel %vm1159_vm8, %v763_v47, 0.0  ;;  %v549_v63 = vsel %vm1167_vm9, %v763_v47, 0.0 }
 0x26b   :  { %v411_v57 = vpop.f32.mrf.mxu1  ;;  %v454_v32 = vsel %vm296_vm6, %v436_v55, 0.0  ;;  %v567_v15 = vsel %vm296_vm6, %v549_v63, 0.0 }
 0x26c   :  { %449 = vadd.xlane.f32.xlu1 %v448_v41  ;;  %v435_v61 = vsel %vm1159_vm8, %v411_v57, 0.0  ;;  %v548_v7 = vsel %vm1167_vm9, %v411_v57, 0.0 }
 0x26d   :  { %v766_v62 = vpop.f32.mrf.mxu1  ;;  %v451_v3 = vsel %vm296_vm6, %v435_v61, 0.0  ;;  %v564_v22 = vsel %vm296_vm6, %v548_v7, 0.0 }
 0x26e   :  { %446 = vadd.xlane.f32.xlu0 %v445_v49  ;;  %v438_v9 = vsel %vm1159_vm8, %v766_v62, 0.0  ;;  %v551_v25 = vsel %vm1167_vm9, %v766_v62, 0.0 }
 0x26f   :  { %v421_v17 = vpop.f32.mrf.mxu1  ;;  %v460_v23 = vsel %vm296_vm6, %v438_v9, 0.0  ;;  %v573_v31 = vsel %vm296_vm6, %v551_v25, 0.0 }
 0x270   :  { %562 = vadd.xlane.f32.xlu1 %v561_v56  ;;  %v437_v24 = vsel %vm1159_vm8, %v421_v17, 0.0  ;;  %v550_v8 = vsel %vm1167_vm9, %v421_v17, 0.0 }
 0x271   :  { %v457_v30 = vsel %vm296_vm6, %v437_v24, 0.0  ;;  %v570_v33 = vsel %vm296_vm6, %v550_v8, 0.0 }
 0x272   :  { %559 = vadd.xlane.f32.xlu0 %v558_v58 }
 0x274   :  { %455 = vadd.xlane.f32.xlu1 %v454_v32 }
 0x276   :  { %452 = vadd.xlane.f32.xlu0 %v451_v3 }
 0x278   :  { %568 = vadd.xlane.f32.xlu1 %v567_v15 }
 0x27a   :  { %565 = vadd.xlane.f32.xlu0 %v564_v22 }
 0x27c   :  { %461 = vadd.xlane.f32.xlu1 %v460_v23 }
 0x27e   :  { %458 = vadd.xlane.f32.xlu0 %v457_v30 }
 0x280   :  { %574 = vadd.xlane.f32.xlu1 %v573_v31 }
 0x282   :  { %571 = vadd.xlane.f32.xlu0 %v570_v33 }
 0x2ed   :  { %v444_v34 = vpop.xlane.xlu1 %443 }
 0x2ee   :  { %v701_v14 = vmul.f32 -1.442695, %v444_v34 }
 0x2ef   :  { %v441_v39 = vpop.xlane.xlu0 %440 }
 0x2f0   :  { %773 = vpow2.f32 %v701_v14  ;;  %v700_v40 = vmul.f32 -1.442695, %v441_v39 }
 0x2f1   :  { %v557_v41 = vpop.xlane.xlu1 %556 }
 0x2f2   :  { %775 = vpow2.f32 %v700_v40  ;;  %v709_v42 = vmul.f32 -1.442695, %v557_v41 }
 0x2f3   :  { %v554_v47 = vpop.xlane.xlu0 %553 }
 0x2f4   :  { %777 = vpow2.f32 %v709_v42  ;;  %v708_v48 = vmul.f32 -1.442695, %v554_v47 }
 0x2f5   :  { %v450_v16 = vpop.xlane.xlu1 %449 }
 0x2f6   :  { %779 = vpow2.f32 %v708_v48  ;;  %v703_v49 = vmul.f32 -1.442695, %v450_v16 }
 0x2f7   :  { %v447_v50 = vpop.xlane.xlu0 %446 }
 0x2f8   :  { %781 = vpow2.f32 %v703_v49  ;;  %v702_v55 = vmul.f32 -1.442695, %v447_v50 }
 0x2f9   :  { %v563_v56 = vpop.xlane.xlu1 %562 }
 0x2fa   :  { %783 = vpow2.f32 %v702_v55  ;;  %v711_v57 = vmul.f32 -1.442695, %v563_v56 }
 0x2fb   :  { %v560_v58 = vpop.xlane.xlu0 %559 }
 0x2fc   :  { %785 = vpow2.f32 %v711_v57  ;;  %v710_v32 = vmul.f32 -1.442695, %v560_v58 }
 0x2fd   :  { %v774_v61 = vpop.eup %773  ;;  %v456_v62 = vpop.xlane.xlu1 %455 }
 0x2fe   :  { %v488_v63 = vadd.f32 1.0, %v774_v61  ;;  %787 = vpow2.f32 %v710_v32  ;;  %v705_v3 = vmul.f32 -1.442695, %v456_v62 }
 0x2ff   :  { %v776_v7 = vpop.eup %775  ;;  %v453_v9 = vpop.xlane.xlu0 %452 }
 0x300   :  { %789 = vrcp.f32 %v488_v63  ;;  %v487_v15 = vadd.f32 1.0, %v776_v7  ;;  %v704_v17 = vmul.f32 -1.442695, %v453_v9 }
 0x301   :  { %v778_v22 = vpop.eup %777  ;;  %791 = vpow2.f32 %v705_v3  ;;  %v569_v23 = vpop.xlane.xlu1 %568 }
 0x302   :  { %793 = vrcp.f32 %v487_v15  ;;  %v601_v24 = vadd.f32 1.0, %v778_v22  ;;  %v713_v25 = vmul.f32 -1.442695, %v569_v23 }
 0x303   :  { %v780_v30 = vpop.eup %779  ;;  %795 = vpow2.f32 %v704_v17  ;;  %v566_v8 = vpop.xlane.xlu0 %565 }
 0x304   :  { %797 = vrcp.f32 %v601_v24  ;;  %v600_v31 = vadd.f32 1.0, %v780_v30  ;;  %v712_v33 = vmul.f32 -1.442695, %v566_v8 }
 0x305   :  { %v782_v34 = vpop.eup %781  ;;  %799 = vpow2.f32 %v713_v25  ;;  %v462_v14 = vpop.xlane.xlu1 %461 }
 0x306   :  { %801 = vrcp.f32 %v600_v31  ;;  %v490_v39 = vadd.f32 1.0, %v782_v34  ;;  %v707_v40 = vmul.f32 -1.442695, %v462_v14 }
 0x307   :  { %v784_v41 = vpop.eup %783  ;;  %803 = vpow2.f32 %v712_v33  ;;  %v459_v42 = vpop.xlane.xlu0 %458 }
 0x308   :  { %805 = vrcp.f32 %v490_v39  ;;  %v489_v47 = vadd.f32 1.0, %v784_v41  ;;  %v706_v48 = vmul.f32 -1.442695, %v459_v42 }
 0x309   :  { %v786_v16 = vpop.eup %785  ;;  %807 = vpow2.f32 %v707_v40  ;;  %v575_v49 = vpop.xlane.xlu1 %574 }
 0x30a   :  { %809 = vrcp.f32 %v489_v47  ;;  %v603_v50 = vadd.f32 1.0, %v786_v16  ;;  %v715_v55 = vmul.f32 -1.442695, %v575_v49 }
 0x30b   :  { %v788_v56 = vpop.eup %787  ;;  %811 = vpow2.f32 %v706_v48  ;;  %v572_v57 = vpop.xlane.xlu0 %571 }
 0x30c   :  { %813 = vrcp.f32 %v603_v50  ;;  %v602_v58 = vadd.f32 1.0, %v788_v56  ;;  %v714_v32 = vmul.f32 -1.442695, %v572_v57 }
 0x30d   :  { %v790_v61 = vpop.eup %789  ;;  %815 = vpow2.f32 %v715_v55 }
 0x30e   :  { %v792_v62 = vpop.eup %791  ;;  %v513_v63 = vmul.f32 %v790_v61, %v1002_v45  ;;  %v514_v3 = vmul.f32 %v790_v61, %v1004_v46  ;;  %817 = vrcp.f32 %v602_v58 }
 0x30f   :  { %v794_v7 = vpop.eup %793  ;;  %v492_v9 = vadd.f32 1.0, %v792_v62  ;;  %819 = vpow2.f32 %v714_v32 }
 0x310   :  { %v796_v15 = vpop.eup %795  ;;  %529 = vst [vmem:[#allocation5 + $0x10] sm:$0xff] %v513_v63  ;;  %530 = vst [vmem:[#allocation5 + $0x18] sm:$0xff] %v514_v3  ;;  %v511_v17 = vmul.f32 %v794_v7, %v1018_v53  ;;  %v512_v22 = vmul.f32 %v794_v7, %v1020_v54 }
 0x311   :  { %v798_v23 = vpop.eup %797  ;;  %821 = vrcp.f32 %v492_v9  ;;  %v491_v24 = vadd.f32 1.0, %v796_v15 }
 0x312   :  { %v800_v25 = vpop.eup %799  ;;  %527 = vst [vmem:[#allocation5] sm:$0xff] %v511_v17  ;;  %528 = vst [vmem:[#allocation5 + $0x8] sm:$0xff] %v512_v22  ;;  %v642_v45 = vmul.f32 %v798_v23, %v1014_v51  ;;  %v643_v46 = vmul.f32 %v798_v23, %v1016_v52 }
 0x313   :  { %v802_v30 = vpop.eup %801  ;;  %823 = vrcp.f32 %v491_v24  ;;  %v605_v8 = vadd.f32 1.0, %v800_v25 }
 0x314   :  { %v804_v31 = vpop.eup %803  ;;  %659 = vst [vmem:[#allocation5 + $0x90] sm:$0xff] %v642_v45  ;;  %660 = vst [vmem:[#allocation5 + $0x98] sm:$0xff] %v643_v46  ;;  %v640_v53 = vmul.f32 %v802_v30, %v1030_v59  ;;  %v641_v54 = vmul.f32 %v802_v30, %v1032_v60 }
 0x315   :  { %v806_v33 = vpop.eup %805  ;;  %825 = vrcp.f32 %v605_v8  ;;  %v604_v34 = vadd.f32 1.0, %v804_v31 }
 0x316   :  { %v808_v14 = vpop.eup %807  ;;  %657 = vst [vmem:[#allocation5 + $0x80] sm:$0xff] %v640_v53  ;;  %658 = vst [vmem:[#allocation5 + $0x88] sm:$0xff] %v641_v54  ;;  %v517_v51 = vmul.f32 %v806_v33, %v969_v28  ;;  %v518_v52 = vmul.f32 %v806_v33, %v971_v29 }
 0x317   :  { %v810_v39 = vpop.eup %809  ;;  %827 = vrcp.f32 %v604_v34  ;;  %v494_v40 = vadd.f32 1.0, %v808_v14 }
 0x318   :  { %v812_v41 = vpop.eup %811  ;;  %533 = vst [vmem:[#allocation5 + $0x30] sm:$0xff] %v517_v51  ;;  %534 = vst [vmem:[#allocation5 + $0x38] sm:$0xff] %v518_v52  ;;  %v515_v59 = vmul.f32 %v810_v39, %v986_v37  ;;  %v516_v60 = vmul.f32 %v810_v39, %v988_v38 }
 0x319   :  { %v814_v42 = vpop.eup %813  ;;  %829 = vrcp.f32 %v494_v40  ;;  %v493_v47 = vadd.f32 1.0, %v812_v41 }
 0x31a   :  { %v816_v48 = vpop.eup %815  ;;  %531 = vst [vmem:[#allocation5 + $0x20] sm:$0xff] %v515_v59  ;;  %532 = vst [vmem:[#allocation5 + $0x28] sm:$0xff] %v516_v60  ;;  %v646_v28 = vmul.f32 %v814_v42, %v982_v35  ;;  %v647_v29 = vmul.f32 %v814_v42, %v984_v36 }
 0x31b   :  { %v818_v16 = vpop.eup %817  ;;  %831 = vrcp.f32 %v493_v47  ;;  %v607_v49 = vadd.f32 1.0, %v816_v48 }
 0x31c   :  { %v820_v50 = vpop.eup %819  ;;  %663 = vst [vmem:[#allocation5 + $0xb0] sm:$0xff] %v646_v28  ;;  %664 = vst [vmem:[#allocation5 + $0xb8] sm:$0xff] %v647_v29  ;;  %v644_v37 = vmul.f32 %v818_v16, %v998_v43  ;;  %v645_v38 = vmul.f32 %v818_v16, %v1000_v44 }
 0x31d   :  { %833 = vrcp.f32 %v607_v49  ;;  %v606_v55 = vadd.f32 1.0, %v820_v50 }
 0x31e   :  { %v822_v56 = vpop.eup %821  ;;  %661 = vst [vmem:[#allocation5 + $0xa0] sm:$0xff] %v644_v37  ;;  %662 = vst [vmem:[#allocation5 + $0xa8] sm:$0xff] %v645_v38 }
 0x31f   :  { %v521_v57 = vmul.f32 %v822_v56, %v937_v12  ;;  %v522_v35 = vmul.f32 %v822_v56, %v939_v13  ;;  %835 = vrcp.f32 %v606_v55 }
 0x320   :  { %v824_v36 = vpop.eup %823 }
 0x321   :  { %537 = vst [vmem:[#allocation5 + $0x50] sm:$0xff] %v521_v57  ;;  %538 = vst [vmem:[#allocation5 + $0x58] sm:$0xff] %v522_v35  ;;  %v519_v58 = vmul.f32 %v824_v36, %v953_v20  ;;  %v520_v32 = vmul.f32 %v824_v36, %v955_v21 }
 0x322   :  { %v826_v43 = vpop.eup %825 }
 0x323   :  { %535 = vst [vmem:[#allocation5 + $0x40] sm:$0xff] %v519_v58  ;;  %536 = vst [vmem:[#allocation5 + $0x48] sm:$0xff] %v520_v32  ;;  %v650_v44 = vmul.f32 %v826_v43, %v949_v18  ;;  %v651_v61 = vmul.f32 %v826_v43, %v951_v19 }
 0x324   :  { %v828_v62 = vpop.eup %827 }
 0x325   :  { %667 = vst [vmem:[#allocation5 + $0xd0] sm:$0xff] %v650_v44  ;;  %668 = vst [vmem:[#allocation5 + $0xd8] sm:$0xff] %v651_v61  ;;  %v648_v12 = vmul.f32 %v828_v62, %v965_v26  ;;  %v649_v13 = vmul.f32 %v828_v62, %v967_v27 }
 0x326   :  { %v830_v63 = vpop.eup %829 }
 0x327   :  { %665 = vst [vmem:[#allocation5 + $0xc0] sm:$0xff] %v648_v12  ;;  %666 = vst [vmem:[#allocation5 + $0xc8] sm:$0xff] %v649_v13  ;;  %v525_v20 = vmul.f32 %v830_v63, %v917_v2  ;;  %v526_v21 = vmul.f32 %v830_v63, %v921_v4 }
 0x328   :  { %v832_v3 = vpop.eup %831 }
 0x329   :  { %541 = vst [vmem:[#allocation5 + $0x70] sm:$0xff] %v525_v20  ;;  %542 = vst [vmem:[#allocation5 + $0x78] sm:$0xff] %v526_v21  ;;  %v523_v18 = vmul.f32 %v832_v3, %v923_v5  ;;  %v524_v19 = vmul.f32 %v832_v3, %v925_v6 }
 0x32a   :  { %v834_v7 = vpop.eup %833 }
 0x32b   :  { %539 = vst [vmem:[#allocation5 + $0x60] sm:$0xff] %v523_v18  ;;  %540 = vst [vmem:[#allocation5 + $0x68] sm:$0xff] %v524_v19  ;;  %v654_v26 = vmul.f32 %v834_v7, %v913_v0  ;;  %v655_v27 = vmul.f32 %v834_v7, %v915_v1 }
 0x32c   :  { %v836_v9 = vpop.eup %835 }
 0x32d   :  { %671 = vst [vmem:[#allocation5 + $0xf0] sm:$0xff] %v654_v26  ;;  %672 = vst [vmem:[#allocation5 + $0xf8] sm:$0xff] %v655_v27  ;;  %v652_v2 = vmul.f32 %v836_v9, %v933_v10  ;;  %v653_v4 = vmul.f32 %v836_v9, %v935_v11 }
 0x32f   :  { %669 = vst [vmem:[#allocation5 + $0xe0] sm:$0xff] %v652_v2  ;;  %670 = vst [vmem:[#allocation5 + $0xe8] sm:$0xff] %v653_v4 }
 0x330   :  { %868 = shalt.err (!%p865_p9)
}
 0x331   :  { %684 = dma.vmem_to_hbm [thread:$0]  %s679_s8, 4096, %s1260_s3, [#allocation4], %s882_s15, %s882_s15, %s883_s16  }
 0x332   :  { %879 = dma.done.wait [#allocation4], 4096  }
 0x333   :  { %880 = vsyncadd [#allocation4], 4294963200 }
 0x334   :  { %688 = vsyncpa [#allocation3], 1 }
 0x335   :  { %689 = vsyncpa [#allocation4], 1 }

</bundles_post_ra>
